<compile_context>
chip_gen: v7x
topology: tpu7x:2x2x1
jax: 0.10.0
libtpu: 0.0.40
codegen_flags: <defaults>
</compile_context>

<pallas_src>
import jax
import jax.numpy as jnp
from jax.experimental import pallas as pl
from jax.experimental.pallas import tpu as pltpu

INPUT_DIM = 5
OUTPUT_DIM = 1
HIDDEN_LAYERS = [32, 32]          # user-supplied; __init__ appends OUTPUT_DIM


def _mlp_kernel(x_ref, w0_ref, b0_ref, w1_ref, b1_ref, w2_ref, b2_ref, o_ref):
    """One batch-tile of the fused 3-layer convex MLP, feature-major (features x batch)."""
    # ---- layer 0: Linear(5 -> 32) + ReLU -----------------------------------------------
    # x arrives untransposed as a (bt, 5) f32 tile.  "NT" dot_general (contracting dim 1 of
    # both operands) computes h = W0 @ x^T -> (32, bt) so batch lands on the lane axis.
    # K=5, M=32 barely touches the MXU either way, so inputs stay f32 (full precision).
    h = jax.lax.dot_general(
        w0_ref[...], x_ref[...],
        dimension_numbers=(((1,), (1,)), ((), ())),
        preferred_element_type=jnp.float32,
    ) + b0_ref[...]                                                  # (32, bt) f32
    h = jnp.maximum(h, 0.0)

    # ---- layer 1: Linear(32 -> 32) + ReLU (weights clamped >= 0 at init) ----------------
    # bf16 x bf16 MXU matmul with f32 accumulate (one pass instead of a multi-pass f32
    # decomposition); bias add + ReLU stay f32.
    h = jnp.dot(w1_ref[...], h.astype(jnp.bfloat16),
                preferred_element_type=jnp.float32) + b1_ref[...]    # (32, bt) f32
    h = jnp.maximum(h, 0.0)

    # ---- layer 2 (last main layer): Linear(32 -> 1), NO ReLU ----------------------------
    # VPU broadcast-multiply + XLU sublane reduce instead of an M=1 MXU matmul; result is a
    # lane-dense (1, bt) row -> unmasked vst / contiguous HBM writeback.
    out = jnp.sum(h * w2_ref[...], axis=0, keepdims=True) + b2_ref[...]   # (1, bt) f32

    # NeuralFeasibilityCvx.forward returns the negated ConvexNN output.
    o_ref[...] = (-out).astype(o_ref.dtype)


def _round_up(n, m):
    return ((n + m - 1) // m) * m


def _pick_batch_tile(batch):
    # Biggest tile that (a) amortizes per-step overhead, (b) stays inside v7x's 32 MiB
    # scoped VMEM at the 32768 cap, (c) yields >= 2 balanced tiles for v7x's two TCs.
    return min(32768, _round_up(max(1, -(-batch // 2)), 128))


def neural_feasibility_cvx(x, params, *, batch_tile=None):
    """x: (B, 5) float32.  params: torch-layout weights W{i}: (out,in), b{i}: (out,)."""
    B, D = x.shape
    assert D == INPUT_DIM
    if batch_tile is None:
        batch_tile = _pick_batch_tile(B)
    assert batch_tile % 128 == 0, "batch_tile must be lane-aligned (multiple of 128)"

    num_tiles = -(-B // batch_tile)
    b_pad = num_tiles * batch_tile
    if b_pad != B:
        # Zero-pad the batch; padded rows are inert (nothing reduces over batch in-kernel)
        # and are sliced off below.
        x = jnp.pad(x, ((0, b_pad - B), (0, 0)))

    w0 = params["W0"]                                  # (32, 5)  f32
    b0 = params["b0"].reshape(-1, 1)                   # (32, 1)  f32
    w1 = params["W1"].astype(jnp.bfloat16)             # (32, 32) bf16 (MXU input)
    b1 = params["b1"].reshape(-1, 1)                   # (32, 1)  f32
    w2 = params["W2"].reshape(-1, 1)                   # (32, 1)  f32 column (W2 is (1,32))
    b2 = params["b2"].reshape(1, 1)                    # (1, 1)   f32

    def full_block(arr):
        # Full-array block, constant block index => VMEM-resident across the grid, no re-DMA.
        return pl.BlockSpec(arr.shape, lambda i: (0, 0))

    flops = 2 * b_pad * (INPUT_DIM * 32 + 32 * 32 + 32)
    bytes_accessed = int(
        b_pad * INPUT_DIM * 4 + b_pad * 4
        + sum(int(a.size) * a.dtype.itemsize for a in (w0, b0, w1, b1, w2, b2)))

    out_t = pl.pallas_call(
        _mlp_kernel,
        out_shape=jax.ShapeDtypeStruct((1, b_pad), jnp.float32),
        grid_spec=pltpu.PrefetchScalarGridSpec(
            num_scalar_prefetch=0,
            grid=(num_tiles,),
            in_specs=[
                pl.BlockSpec((batch_tile, INPUT_DIM), lambda i: (i, 0)),   # streamed x tile
                full_block(w0), full_block(b0),
                full_block(w1), full_block(b1),
                full_block(w2), full_block(b2),
            ],
            out_specs=pl.BlockSpec((1, batch_tile), lambda i: (0, i)),     # lane-dense output
        ),
        compiler_params=pltpu.CompilerParams(
            dimension_semantics=("parallel",),
            vmem_limit_bytes=32 * 1024 * 1024,
        ),
        cost_estimate=pl.CostEstimate(
            flops=flops, transcendentals=0, bytes_accessed=bytes_accessed),
    )(x, w0, b0, w1, b1, w2, b2)

    # Back to the module's (B, 1) shape; drop batch padding.
    return out_t[0, :B].reshape(B, OUTPUT_DIM)


def init_params(key):
    """Deterministic init mimicking nn.Linear defaults (torch layout W: (out,in), b: (out,));
    main layers with index > 0 are clamped to >= 0 as in ConvexNN.__init__."""
    dims = [INPUT_DIM] + list(HIDDEN_LAYERS) + [OUTPUT_DIM]   # [5, 32, 32, 1]
    params = {}
    for idx in range(len(dims) - 1):
        fan_in, fan_out = dims[idx], dims[idx + 1]
        key, kw, kb = jax.random.split(key, 3)
        bound = 1.0 / float(jnp.sqrt(fan_in))
        w = jax.random.uniform(kw, (fan_out, fan_in), jnp.float32, -bound, bound)
        b = jax.random.uniform(kb, (fan_out,), jnp.float32, -bound, bound)
        if idx > 0:
            w = jnp.maximum(w, 0.0)   # weight.clamp_(min=0) for non-first layers
        params[f"W{idx}"] = w
        params[f"b{idx}"] = b
    # NOTE: additional_layers and output_layer are dead code in the PyTorch forward
    # (their result is unconditionally overwritten), so they are not materialized.
    return params


def _reference(x, params):
    """Pure-JAX reference mirroring the kernel's precisions (f32 layer 0, bf16-input layer 1)."""
    hi = jax.lax.Precision.HIGHEST
    h = jnp.maximum(jnp.dot(x, params["W0"].T, precision=hi) + params["b0"], 0.0)
    h16 = h.astype(jnp.bfloat16).astype(jnp.float32)
    w116 = params["W1"].astype(jnp.bfloat16).astype(jnp.float32)
    h = jnp.maximum(jnp.dot(h16, w116.T, precision=hi) + params["b1"], 0.0)
    return -(jnp.dot(h, params["W2"].T, precision=hi) + params["b2"])


if __name__ == "__main__":
    key = jax.random.PRNGKey(0)
    key, kx = jax.random.split(key)
    B = 512                                   # small demo: 2 lane-aligned tiles of 256 rows
    x = jax.random.normal(kx, (B, INPUT_DIM), jnp.float32)

    params = init_params(key)

    out = neural_feasibility_cvx(x, params)
    out = jax.block_until_ready(out)

    ref = _reference(x, params)
    assert out.shape == (B, OUTPUT_DIM)
    assert jnp.allclose(out, ref, atol=1e-2, rtol=1e-2), "mismatch vs reference"
    print("KERNEL_OK")
</pallas_src>

<mosaic_0001>
module attributes {stable_mosaic.version = 11 : i64} {
  func.func @_mlp_kernel(%arg0: i32, %arg1: memref<256x5xf32, #tpu.memory_space<vmem>>, %arg2: memref<32x5xf32, #tpu.memory_space<vmem>>, %arg3: memref<32x1xf32, #tpu.memory_space<vmem>>, %arg4: memref<32x32xbf16, #tpu.memory_space<vmem>>, %arg5: memref<32x1xf32, #tpu.memory_space<vmem>>, %arg6: memref<32x1xf32, #tpu.memory_space<vmem>>, %arg7: memref<1x1xf32, #tpu.memory_space<vmem>>, %arg8: memref<1x256xf32, #tpu.memory_space<vmem>>) attributes {dimension_semantics = [#tpu.dimension_semantics<parallel>], iteration_bounds = array<i64: 2>, scalar_prefetch = 0 : i64, scratch_operands = 0 : i64, tpu.core_type = #tpu.core_type<tc>, window_params = [{transform_indices = @transform_0, window_bounds = array<i64: 256, 5>}, {pipeline_mode = #tpu.pipeline_mode<synchronous>, transform_indices = @transform_1, window_bounds = array<i64: 32, 5>}, {pipeline_mode = #tpu.pipeline_mode<synchronous>, transform_indices = @transform_2, window_bounds = array<i64: 32, 1>}, {pipeline_mode = #tpu.pipeline_mode<synchronous>, transform_indices = @transform_3, window_bounds = array<i64: 32, 32>}, {pipeline_mode = #tpu.pipeline_mode<synchronous>, transform_indices = @transform_4, window_bounds = array<i64: 32, 1>}, {pipeline_mode = #tpu.pipeline_mode<synchronous>, transform_indices = @transform_5, window_bounds = array<i64: 32, 1>}, {pipeline_mode = #tpu.pipeline_mode<synchronous>, transform_indices = @transform_6, window_bounds = array<i64: 1, 1>}, {transform_indices = @transform_7, window_bounds = array<i64: 1, 256>}]} {
    %c0 = arith.constant 0 : index
    %c0_0 = arith.constant 0 : index
    %0 = vector.load %arg2[%c0, %c0_0] : memref<32x5xf32, #tpu.memory_space<vmem>>, vector<32x5xf32>
    %c0_1 = arith.constant 0 : index
    %c0_2 = arith.constant 0 : index
    %1 = vector.load %arg1[%c0_1, %c0_2] : memref<256x5xf32, #tpu.memory_space<vmem>>, vector<256x5xf32>
    %cst = arith.constant dense<0.000000e+00> : vector<32x256xf32>
    %2 = tpu.matmul %0, %1, %cst {dimension_numbers = #tpu.dot_dimension_numbers<[1], [1], [0], [0], [0, 0, 1, 0], [], []>} : vector<32x5xf32>, vector<256x5xf32>, vector<32x256xf32> -> vector<32x256xf32>
    %c0_3 = arith.constant 0 : index
    %c0_4 = arith.constant 0 : index
    %3 = vector.load %arg3[%c0_3, %c0_4] : memref<32x1xf32, #tpu.memory_space<vmem>>, vector<32x1xf32>
    %4 = vector.broadcast %3 : vector<32x1xf32> to vector<32x256xf32>
    %5 = arith.addf %2, %4 : vector<32x256xf32>
    %cst_5 = arith.constant 0.000000e+00 : f32
    %6 = vector.broadcast %cst_5 : f32 to vector<32x256xf32>
    %7 = arith.maximumf %5, %6 : vector<32x256xf32>
    %c0_6 = arith.constant 0 : index
    %c0_7 = arith.constant 0 : index
    %8 = vector.load %arg4[%c0_6, %c0_7] : memref<32x32xbf16, #tpu.memory_space<vmem>>, vector<32x32xbf16>
    %9 = arith.truncf %7 : vector<32x256xf32> to vector<32x256xbf16>
    %cst_8 = arith.constant dense<0.000000e+00> : vector<32x256xf32>
    %10 = tpu.matmul %8, %9, %cst_8 {dimension_numbers = #tpu.dot_dimension_numbers<[1], [0], [0], [1], [0, 0, 1, 1], [], []>} : vector<32x32xbf16>, vector<32x256xbf16>, vector<32x256xf32> -> vector<32x256xf32>
    %c0_9 = arith.constant 0 : index
    %c0_10 = arith.constant 0 : index
    %11 = vector.load %arg5[%c0_9, %c0_10] : memref<32x1xf32, #tpu.memory_space<vmem>>, vector<32x1xf32>
    %12 = vector.broadcast %11 : vector<32x1xf32> to vector<32x256xf32>
    %13 = arith.addf %10, %12 : vector<32x256xf32>
    %cst_11 = arith.constant 0.000000e+00 : f32
    %14 = vector.broadcast %cst_11 : f32 to vector<32x256xf32>
    %15 = arith.maximumf %13, %14 : vector<32x256xf32>
    %c0_12 = arith.constant 0 : index
    %c0_13 = arith.constant 0 : index
    %16 = vector.load %arg6[%c0_12, %c0_13] : memref<32x1xf32, #tpu.memory_space<vmem>>, vector<32x1xf32>
    %17 = vector.broadcast %16 : vector<32x1xf32> to vector<32x256xf32>
    %18 = arith.mulf %15, %17 : vector<32x256xf32>
    %cst_14 = arith.constant dense<0.000000e+00> : vector<256xf32>
    %19 = vector.multi_reduction <add>, %18, %cst_14 [0] : vector<32x256xf32> to vector<256xf32>
    %20 = vector.shape_cast %19 : vector<256xf32> to vector<1x256xf32>
    %c0_15 = arith.constant 0 : index
    %c0_16 = arith.constant 0 : index
    %21 = vector.load %arg7[%c0_15, %c0_16] : memref<1x1xf32, #tpu.memory_space<vmem>>, vector<1x1xf32>
    %22 = vector.broadcast %21 : vector<1x1xf32> to vector<1x256xf32>
    %23 = arith.addf %20, %22 : vector<1x256xf32>
    %cst_17 = arith.constant 0.000000e+00 : f32
    %24 = vector.broadcast %cst_17 : f32 to vector<1x256xf32>
    %25 = arith.subf %24, %23 : vector<1x256xf32>
    %c0_18 = arith.constant 0 : index
    %c0_19 = arith.constant 0 : index
    %26 = vector.load %arg8[%c0_18, %c0_19] : memref<1x256xf32, #tpu.memory_space<vmem>>, vector<1x256xf32>
    tpu.vector_store %arg8[%c0_18, %c0_19], %25 {strides = array<i32>} : memref<1x256xf32, #tpu.memory_space<vmem>>, vector<1x256xf32>,
    return
  }
  func.func @transform_0(%arg0: i32) -> (i32, i32) {
    %c0_i32 = arith.constant 0 : i32
    %c0_i32_0 = arith.constant 0 : i32
    return %arg0, %c0_i32 : i32, i32
  }
  func.func @transform_1(%arg0: i32) -> (i32, i32) {
    %c0_i32 = arith.constant 0 : i32
    %c0_i32_0 = arith.constant 0 : i32
    %c0_i32_1 = arith.constant 0 : i32
    return %c0_i32, %c0_i32_0 : i32, i32
  }
  func.func @transform_2(%arg0: i32) -> (i32, i32) {
    %c0_i32 = arith.constant 0 : i32
    %c0_i32_0 = arith.constant 0 : i32
    %c0_i32_1 = arith.constant 0 : i32
    return %c0_i32, %c0_i32_0 : i32, i32
  }
  func.func @transform_3(%arg0: i32) -> (i32, i32) {
    %c0_i32 = arith.constant 0 : i32
    %c0_i32_0 = arith.constant 0 : i32
    %c0_i32_1 = arith.constant 0 : i32
    return %c0_i32, %c0_i32_0 : i32, i32
  }
  func.func @transform_4(%arg0: i32) -> (i32, i32) {
    %c0_i32 = arith.constant 0 : i32
    %c0_i32_0 = arith.constant 0 : i32
    %c0_i32_1 = arith.constant 0 : i32
    return %c0_i32, %c0_i32_0 : i32, i32
  }
  func.func @transform_5(%arg0: i32) -> (i32, i32) {
    %c0_i32 = arith.constant 0 : i32
    %c0_i32_0 = arith.constant 0 : i32
    %c0_i32_1 = arith.constant 0 : i32
    return %c0_i32, %c0_i32_0 : i32, i32
  }
  func.func @transform_6(%arg0: i32) -> (i32, i32) {
    %c0_i32 = arith.constant 0 : i32
    %c0_i32_0 = arith.constant 0 : i32
    %c0_i32_1 = arith.constant 0 : i32
    return %c0_i32, %c0_i32_0 : i32, i32
  }
  func.func @transform_7(%arg0: i32) -> (i32, i32) {
    %c0_i32 = arith.constant 0 : i32
    %c0_i32_0 = arith.constant 0 : i32
    return %c0_i32, %arg0 : i32, i32
  }
}

</mosaic_0001>

<bundles_post_ra>
// kernel: tpu_custom_call.1
= control target key start
LH: loop header
LB: loop body
LE: loop exit
PB: predicated region body
PF: predicated region fallthrough
CT: control target
= control target key end

     0   :  { %s1357_s0 = inlined_call_operand.vmem [shape: f32[512,5], index: 0, kind: input, shape index: {}]   ;;  %s1358_s1 = inlined_call_operand.vmem [shape: f32[32,5], index: 1, kind: input, shape index: {}]   ;;  %s1359_s2 = inlined_call_operand.vmem [shape: f32[32,1], index: 2, kind: input, shape index: {}]   ;;  %s1360_s3 = inlined_call_operand.vmem [shape: bf16[32,32], index: 3, kind: input, shape index: {}]   ;;  %s1361_s4 = inlined_call_operand.vmem [shape: f32[32,1], index: 4, kind: input, shape index: {}]   ;;  %s1362_s5 = inlined_call_operand.vmem [shape: f32[32,1], index: 5, kind: input, shape index: {}]   ;;  %s1363_s6 = inlined_call_operand.<no memory space> [shape: f32[1,1], index: 6, kind: input, shape index: {}]   ;;  %s1364_s7 = inlined_call_operand.hbm [shape: f32[1,512], index: 7, kind: output, shape index: {}]  }
   0x1   :  { %v12_v0 = vstv %s1363_s6 }
   0x2   :  { %13 = vst [vmem:[#allocation2] sm:$0x1] %v12_v0 }
   0x3   :  { %14 = vsyncpa [#allocation4], 0 }
   0x4   :  { %16 = vsyncpa [#allocation4 + $0x1], 0  ;;  %s1116_s26 = smov 0   ;;  %s1118_s27 = smov 0  }
   0x5   :  { %s1120_s28 = smov 0   ;;  %s1122_s29 = smov 0  }
   0x6 LB: > { %s819_s6 = sadd.s32 4294967295, %s1068_s29   ;;  %s820_s30 = sadd.s32 4294967294, %s1068_s29   ;;  %s1068_s29 = sphi %s1122_s29, %s1372_s29   ;;  %s1064_s28 = sphi %s1120_s28, %s1371_s28   ;;  %s1060_s27 = sphi %s1118_s27, %s1370_s27   ;;  %s1056_s26 = sphi %s1116_s26, %s1369_s26  }
   0x7   : > { %s1139_s8 = sadd.s32 1, %s1068_s29   ;;  %s181_s9 = sadd.s32 1, %s1064_s28 }
   0x8   : > { %s178_s10 = ssub.s32 %s1068_s29, %s1139_s8  ;;  %p191_p0 = scmp.ne.s32.totalorder %s1064_s28, %s1060_s27 }
   0x9   : > { %p179_p1 = scmp.eq.s32.totalorder %s178_s10, 0  ;;  %p192_p2 = scmp.eq.s32.totalorder %s819_s6, 1 }
   0xa   : > { %p197_p3 = scmp.ne.s32.totalorder %s1060_s27, %s1056_s26  ;;  %p198_p4 = scmp.eq.s32.totalorder %s820_s30, 1 }
   0xb   : > { %s1149_s11 = scalar_select %p179_p1, %s1064_s28, %s181_s9  }
   0xc   : > { %p1151_p5 = por %p192_p2, %p191_p0  ;;  %p1155_p6 = por %p198_p4, %p197_p3 }
   0xd   : > { %p823_p7 = scmp.ge.s32.totalorder %s1068_s29, 1  ;;  %p243_p8 = scmp.lt.s32.totalorder %s1068_s29, 3 }
   0xf   : > { %p244_p9 = pnand %p823_p7, %p243_p8 }
  0x10   : > { %s1161_s14 = sshll.u32 (!%p244_p9), %s819_s6, 5  ;;  %vm343_vm0 = vcmask (!%p244_p9), 39936   ;;  %v1166_v1 = vld [vmem:[%s1358_s1] sm:$0xff] (!%p244_p9)  ;;  %v1070_v2 = vmov (!%p244_p9), 0   ;;  %v321_v4 = vld [vmem:[%s1359_s2 + $0x10] sm:$0xff] (!%p244_p9)  ;;  %v320_v5 = vld [vmem:[%s1359_s2 + $0x8] sm:$0xff] (!%p244_p9) }
  0x11   : > { %247 = sbr.rel (%p244_p9) target bundleno = 597 (0x255), region = 48  ;;  %p276_p10 = scmp.lt.s32.totalorder (!%p244_p9), %s1161_s14, 63  ;;  %905 = vmatprep.mubr.msk.f32.mxu0 (!%p244_p9), %vm343_vm0, %v1166_v1  ;;  %1002 = vset.pattern.permute.xlu0 (!%p244_p9), %v1070_v2  ;;  %v319_v3 = vld [vmem:[%s1359_s2] sm:$0xff] (!%p244_p9)  ;;  %v322_v6 = vld [vmem:[%s1359_s2 + $0x18] sm:$0xff] (!%p244_p9)  ;;  %vm1189_vm1 = vmpackc.low (!%p244_p9), %vm343_vm0, %vm343_vm0  ;;  %vm591_vm2 = vcmask (!%p244_p9), 261120  }
  0x12   : > { %325 = vperm.xlu0 (!%p244_p9), %1002, %v319_v3   ;;  %1003 = vset.pattern.permute.xlu1 (!%p244_p9), %v1070_v2  ;;  %v557_v8 = vld [vmem:[%s1361_s4] sm:$0xff] (!%p244_p9)  ;;  %v558_v9 = vld [vmem:[%s1361_s4 + $0x8] sm:$0xff] (!%p244_p9)  ;;  %v559_v19 = vld [vmem:[%s1361_s4 + $0x10] sm:$0xff] (!%p244_p9)  ;;  %s1315_s18 = scalar_lea.hbm (!%p244_p9), %s1364_s7, %s1161_s14 }
  0x13   : > { %335 = vperm.xlu1 (!%p244_p9), %1003, %v321_v4   ;;  %630 = vmatprep.mubr.bf16.mxu1 (!%p244_p9), %v1070_v2  ;;  %v560_v22 = vld [vmem:[%s1361_s4 + $0x18] sm:$0xff] (!%p244_p9)  ;;  %v659_v26 = vld [vmem:[%s1362_s5] sm:$0xff] (!%p244_p9)  ;;  %v660_v28 = vld [vmem:[%s1362_s5 + $0x8] sm:$0xff] (!%p244_p9) }
  0x14   : > { %v661_v29 = vld [vmem:[%s1362_s5 + $0x10] sm:$0xff] (!%p244_p9)  ;;  %v662_v32 = vld [vmem:[%s1362_s5 + $0x18] sm:$0xff] (!%p244_p9)  ;;  %v709_v36 = vld [vmem:[#allocation2] sm:$0x1] (!%p244_p9) }
  0x15   : > { %v284_v3 = vld [vmem:[%s1358_s1 + $0x8] sm:$0xff] (!%p244_p9)  ;;  %v285_v4 = vld [vmem:[%s1358_s1 + $0x10] sm:$0xff] (!%p244_p9) }
  0x16   : > { %330 = vperm.xlu0 (!%p244_p9), %1002, %v320_v5   ;;  %v286_v5 = vld [vmem:[%s1358_s1 + $0x18] sm:$0xff] (!%p244_p9) }
  0x17   : > { %340 = vperm.xlu1 (!%p244_p9), %1003, %v322_v6  }
  0x18   : > { %s277_s21 = scalar_select %p276_p10, %s1161_s14, 63 }
  0x1a   : > { %s826_s6 = sshll.u32 %s277_s21, 3  ;;  %563 = vperm.xlu0 %1002, %v557_v8  }
  0x1b   : > { %s1199_s16 = scalar_lea.vmem %s1357_s0, %s826_s6  ;;  %568 = vperm.xlu1 %1003, %v558_v9   ;;  %s272_s6 = sand.u32 1, %s1060_s27  }
  0x1c   : > { %v303_v10 = vld [vmem:[%s1199_s16 + $0x80] sm:$0xff]  ;;  %v304_v11 = vld [vmem:[%s1199_s16 + $0x88] sm:$0xff]  ;;  %v305_v15 = vld [vmem:[%s1199_s16 + $0x90] sm:$0xff]  ;;  %s824_s30 = sshll.u32 %s272_s6, 1  ;;  %s747_s19 = scalar_lea.sflag [#allocation4], %s272_s6 }
  0x1d   : > { %v287_v12 = vld [vmem:[%s1199_s16] sm:$0xff]  ;;  %v913_v13 = vpack.c.bf16 %v304_v11, %v303_v10  ;;  %v288_v14 = vld [vmem:[%s1199_s16 + $0x8] sm:$0xff]  ;;  %v306_v16 = vld [vmem:[%s1199_s16 + $0x98] sm:$0xff]  ;;  %s274_s9 = scalar_lea.vmem [#allocation3], %s824_s30 }
  0x1e   : > { %v916_v17 = vpack.c.bf16 %v288_v14, %v287_v12  ;;  %v919_v18 = vpack.c.bf16 %v306_v16, %v305_v15  ;;  %v289_v20 = vld [vmem:[%s1199_s16 + $0x10] sm:$0xff]  ;;  %v290_v21 = vld [vmem:[%s1199_s16 + $0x18] sm:$0xff]  ;;  %v307_v23 = vld [vmem:[%s1199_s16 + $0xa0] sm:$0xff]  ;;  %573 = vperm.xlu0 %1002, %v559_v19   ;;  %s761_s10 = sshll.u32 %s274_s9, 4  ;;  %s1317_s10 = int_to_ptr.vmem [resolvable:$true] %s761_s10 }
  0x1f   : > { %915 = vmatprep.subr.msk.bf16.mxu0 %vm1189_vm1, %v913_v13  ;;  %v308_v24 = vld [vmem:[%s1199_s16 + $0xa8] sm:$0xff]  ;;  %v922_v25 = vpack.c.bf16 %v290_v21, %v289_v20  ;;  %578 = vperm.xlu1 %1003, %v560_v22   ;;  %v291_v30 = vld [vmem:[%s1199_s16 + $0x20] sm:$0xff]  ;;  %v309_v33 = vld [vmem:[%s1199_s16 + $0xb0] sm:$0xff]  ;;  %s1006_s20 = scalar_lea.vmem %s1317_s10, 32 }
  0x20   : > { %918 = vmatpush3.bf16.xpose.msk.msra.mxu0 %vm1189_vm1, %v916_v17  ;;  %v925_v27 = vpack.c.bf16 %v308_v24, %v307_v23  ;;  %v292_v31 = vld [vmem:[%s1199_s16 + $0x28] sm:$0xff]  ;;  %v310_v34 = vld [vmem:[%s1199_s16 + $0xb8] sm:$0xff]  ;;  %v293_v38 = vld [vmem:[%s1199_s16 + $0x30] sm:$0xff]  ;;  %p1007_p11 = scmp.ne.s32.totalorder %s1317_s10, %s1006_s20 }
  0x21   : > { %921 = vmatprep.subr.msk.bf16.mxu0 %vm1189_vm1, %v919_v18  ;;  %v928_v35 = vpack.c.bf16 %v292_v31, %v291_v30  ;;  %v931_v37 = vpack.c.bf16 %v310_v34, %v309_v33  ;;  %v294_v39 = vld [vmem:[%s1199_s16 + $0x38] sm:$0xff]  ;;  %v311_v40 = vld [vmem:[%s1199_s16 + $0xc0] sm:$0xff]  ;;  %v312_v41 = vld [vmem:[%s1199_s16 + $0xc8] sm:$0xff] }
  0x22   : > { %665 = vperm.xlu0 %1002, %v659_v26   ;;  %v934_v42 = vpack.c.bf16 %v294_v39, %v293_v38  ;;  %v937_v43 = vpack.c.bf16 %v312_v41, %v311_v40  ;;  %v295_v44 = vld [vmem:[%s1199_s16 + $0x40] sm:$0xff]  ;;  %v296_v45 = vld [vmem:[%s1199_s16 + $0x48] sm:$0xff]  ;;  %v313_v46 = vld [vmem:[%s1199_s16 + $0xd0] sm:$0xff]  ;;  %p1008_p12 = pnand %p1007_p11, %p1151_p5 }
  0x23   : > { %670 = vperm.xlu1 %1003, %v660_v28   ;;  %v314_v47 = vld [vmem:[%s1199_s16 + $0xd8] sm:$0xff]  ;;  %v940_v48 = vpack.c.bf16 %v296_v45, %v295_v44  ;;  %v297_v50 = vld [vmem:[%s1199_s16 + $0x50] sm:$0xff]  ;;  %v315_v52 = vld [vmem:[%s1199_s16 + $0xe0] sm:$0xff] }
  0x24   : > { %v943_v49 = vpack.c.bf16 %v314_v47, %v313_v46  ;;  %v298_v51 = vld [vmem:[%s1199_s16 + $0x58] sm:$0xff]  ;;  %v316_v53 = vld [vmem:[%s1199_s16 + $0xe8] sm:$0xff]  ;;  %v299_v56 = vld [vmem:[%s1199_s16 + $0x60] sm:$0xff]  ;;  %p1009_p13 = pneg %p1008_p12 }
  0x25   : > { %v946_v54 = vpack.c.bf16 %v298_v51, %v297_v50  ;;  %v949_v55 = vpack.c.bf16 %v316_v53, %v315_v52  ;;  %v300_v57 = vld [vmem:[%s1199_s16 + $0x68] sm:$0xff]  ;;  %v317_v58 = vld [vmem:[%s1199_s16 + $0xf0] sm:$0xff]  ;;  %v318_v59 = vld [vmem:[%s1199_s16 + $0xf8] sm:$0xff] }
  0x26   : > { %675 = vperm.xlu0 %1002, %v661_v29   ;;  %v952_v60 = vpack.c.bf16 %v300_v57, %v299_v56  ;;  %v955_v61 = vpack.c.bf16 %v318_v59, %v317_v58  ;;  %v301_v62 = vld [vmem:[%s1199_s16 + $0x70] sm:$0xff]  ;;  %v302_v63 = vld [vmem:[%s1199_s16 + $0x78] sm:$0xff]  ;;  %v1005_v38 = vld [vmem:[%s1360_s3 + $0x8] sm:$0xff]   ;;  %s1072_s16 = smov [#allocation3]  }
  0x27   : > { %680 = vperm.xlu1 %1003, %v662_v32   ;;  %v958_v0 = vpack.c.bf16 %v302_v63, %v301_v62  ;;  %s1010_s21 = sshll.u32 %s1072_s16, 4  ;;  %s1011_s21 = int_to_ptr.vmem [resolvable:$false] %s1010_s21 }
  0x28   : > { %924 = vmatpush3.bf16.xpose.msk.msra.mxu0 %vm1189_vm1, %v922_v25  ;;  %s1012_s22 = scalar_lea.vmem %s1011_s21, 64  ;;  %p1013_p0 = scmp.lt.s32.totalorder %s1317_s10, %s1011_s21 }
  0x29   : > { %927 = vmatprep.subr.msk.bf16.mxu0 %vm1189_vm1, %v925_v27  ;;  %p1014_p1 = scmp.lt.s32.totalorder %s1012_s22, %s1006_s20 }
  0x2a   : > { %712 = vperm.xlu0 %1002, %v709_v36  }
  0x2b   : > { %p1015_p2 = por %p1014_p1, %p1013_p0 }
  0x2d   : > { %p1016_p3 = pnand %p1015_p2, %p1009_p13 }
  0x30   : > { %930 = vmatpush3.bf16.xpose.msk.msra.mxu0 %vm1189_vm1, %v928_v35 }
  0x31   : > { %933 = vmatprep.subr.msk.bf16.mxu0 %vm1189_vm1, %v931_v37  ;;  %v1004_v37 = vld [vmem:[%s1360_s3] sm:$0xff]  }
  0x38   : > { %936 = vmatpush3.bf16.xpose.msk.msra.mxu0 %vm1189_vm1, %v934_v42 }
  0x39   : > { %939 = vmatprep.subr.msk.bf16.mxu0 %vm1189_vm1, %v937_v43 }
  0x40   : > { %942 = vmatpush3.bf16.xpose.msk.msra.mxu0 %vm1189_vm1, %v940_v48 }
  0x41   : > { %945 = vmatprep.subr.msk.bf16.mxu0 %vm1189_vm1, %v943_v49 }
  0x48   : > { %948 = vmatpush3.bf16.xpose.msk.msra.mxu0 %vm1189_vm1, %v946_v54 }
  0x49   : > { %951 = vmatprep.subr.msk.bf16.mxu0 %vm1189_vm1, %v949_v55 }
  0x50   : > { %954 = vmatpush3.bf16.xpose.msk.msra.mxu0 %vm1189_vm1, %v952_v60 }
  0x51   : > { %957 = vmatprep.subr.msk.bf16.mxu0 %vm1189_vm1, %v955_v61 }
  0x58   : > { %960 = vmatpush3.bf16.xpose.msk.msra.mxu0 %vm1189_vm1, %v958_v0 }
  0x5f   : > { %906 = vmatmul.mubr.msk.f32.vlgmr.msra.gmra.mrb[0].mxu0 %vm343_vm0, %v1166_v1 }
  0x60   : > { %907 = vmatprep.mubr.msk.f32.mxu0 %vm343_vm0, %v284_v3 }
  0x63   : > { %908 = vmatmul.mubr.msk.f32.gmra.mrb[2].mxu0 %vm343_vm0, %v284_v3 }
  0x64   : > { %909 = vmatprep.mubr.msk.f32.mxu0 %vm343_vm0, %v285_v4 }
  0x67   : > { %910 = vmatmul.mubr.msk.f32.gmra.mrb[4].mxu0 %vm343_vm0, %v285_v4 }
  0x68   : > { %911 = vmatprep.mubr.msk.f32.mxu0 %vm343_vm0, %v286_v5 }
  0x6b   : > { %912 = vmatmul.mubr.msk.f32.gmra.mrb[6].mxu0 %vm343_vm0, %v286_v5 }
  0x91   : > { %v326_v1 = vpop.permute.xlu0 %325 }
  0x92   : > { %v336_v14 = vpop.permute.xlu1 %335 }
  0x95   : > { %v331_v9 = vpop.permute.xlu0 %330 }
  0x96   : > { %v341_v25 = vpop.permute.xlu1 %340 }
  0x99   : > { %v564_v39 = vpop.permute.xlu0 %563 }
  0x9a   : > { %v569_v40 = vpop.permute.xlu1 %568 }
  0x9d   : > { %v574_v41 = vpop.permute.xlu0 %573 }
  0x9e   : > { %v579_v42 = vpop.permute.xlu1 %578 }
  0xa1   : > { %v666_v53 = vpop.permute.xlu0 %665 }
  0xa2   : > { %v671_v54 = vpop.permute.xlu1 %670 }
 0x132   : > { %v518_v6 = vpop.f32.mrb[0].mxu0 }
 0x133   : > { %v520_v7 = vpop.f32.mrb[1].mxu0  ;;  %v519_v8 = vadd.f32 %v518_v6, %v326_v1 }
 0x134   : > { %v521_v10 = vadd.f32 %v520_v7, %v326_v1  ;;  %v676_v7 = vpop.permute.xlu0 %675 }
 0x135   : > { %v541_v16 = vmax.f32 %v519_v8, 0.0 }
 0x136   : > { %v524_v11 = vpop.f32.mrb[2].mxu0  ;;  %v542_v18 = vmax.f32 %v521_v10, 0.0 }
 0x137   : > { %v525_v12 = vadd.f32 %v524_v11, %v331_v9  ;;  %v526_v13 = vpop.f32.mrb[3].mxu0 }
 0x138   : > { %v527_v15 = vadd.f32 %v526_v13, %v331_v9 }
 0x139   : > { %v543_v17 = vmax.f32 %v525_v12, 0.0  ;;  %v681_v12 = vpop.permute.xlu1 %680 }
 0x13a   : > { %v544_v19 = vmax.f32 %v527_v15, 0.0  ;;  %v530_v20 = vpop.f32.mrb[4].mxu0 }
 0x13b   : > { %v532_v21 = vpop.f32.mrb[5].mxu0  ;;  %v553_v22 = vpack.c.bf16 %v543_v17, %v541_v16  ;;  %v531_v24 = vadd.f32 %v530_v20, %v336_v14 }
 0x13c   : > { %v554_v23 = vpack.c.bf16 %v544_v19, %v542_v18  ;;  %v533_v26 = vadd.f32 %v532_v21, %v336_v14  ;;  %v715_v19 = vlaneseq }
 0x13d   : > { %v545_v31 = vmax.f32 %v531_v24, 0.0 }
 0x13e   : > { %v536_v27 = vpop.f32.mrb[6].mxu0  ;;  %598 = vmatprep.subr.bf16.mxu1 %v554_v23  ;;  %v546_v33 = vmax.f32 %v533_v26, 0.0  ;;  %v716_v24 = vshrl.u32 %v715_v19, 7  ;;  %vm743_vm3 = vcmp.lt.s32.totalorder %v715_v19, 256 }
 0x13f   : > { %v537_v28 = vadd.f32 %v536_v27, %v341_v25  ;;  %v538_v29 = vpop.f32.mrb[7].mxu0  ;;  %599 = vmatpush1.bf16.msra.mxu1 %v553_v22 }
 0x140   : > { %v539_v30 = vadd.f32 %v538_v29, %v341_v25  ;;  %v717_v29 = vsub.s32 0, %v716_v24 }
 0x141   : > { %v547_v32 = vmax.f32 %v537_v28, 0.0 }
 0x142   : > { %v548_v34 = vmax.f32 %v539_v30, 0.0 }
 0x143   : > { %v555_v35 = vpack.c.bf16 %v547_v32, %v545_v31  ;;  %v1071_v31 = vmov 1966171168  }
 0x144   : > { %v556_v36 = vpack.c.bf16 %v548_v34, %v546_v33  ;;  %v727_v32 = vunpack.c.l.s4 %v1071_v31  ;;  %v713_v33 = vpop.permute.xlu0 %712 }
 0x146   : > { %600 = vmatprep.subr.bf16.mxu1 %v556_v36 }
 0x147   : > { %601 = vmatpush1.bf16.msra.mxu1 %v555_v35 }
 0x14a   : > { %865 = vmatmul.mubr.msk.bf16.vlgmr.msra.gmra.mrb[0].mxu1 %vm591_vm2, %v1004_v37  ;;  %v718_v37 = vrot.slane %v713_v33, %v717_v29 }
 0x14b   : > { %640 = vmatprep.mubr.bf16.mxu1 %v1070_v2 }
 0x152   : > { %866 = vmatmul.mubr.msk.bf16.gmra.mrb[4].mxu1 %vm591_vm2, %v1005_v38 }
 0x21d   : > { %v632_v43 = vpop.f32.mrb[0].mxu1 }
 0x21e   : > { %v633_v44 = vadd.f32 %v632_v43, %v564_v39  ;;  %v634_v45 = vpop.f32.mrb[1].mxu1 }
 0x21f   : > { %v635_v46 = vadd.f32 %v634_v45, %v564_v39  ;;  %v636_v47 = vpop.f32.mrb[2].mxu1  ;;  %v728_v39 = vunpack.c.0.s8 %v727_v32 }
 0x220   : > { %v651_v48 = vmax.f32 %v633_v44, 0.0  ;;  %v637_v49 = vadd.f32 %v636_v47, %v569_v40  ;;  %v638_v50 = vpop.f32.mrb[3].mxu1 }
 0x221   : > { %v652_v51 = vmax.f32 %v635_v46, 0.0  ;;  %v639_v52 = vadd.f32 %v638_v50, %v569_v40  ;;  %v731_v44 = vsub.s32 %v728_v39, %v716_v24 }
 0x222   : > { %v653_v2 = vmax.f32 %v637_v49, 0.0  ;;  %v683_v56 = vmul.f32 %v666_v53, %v651_v48 }
 0x223   : > { %v654_v55 = vmax.f32 %v639_v52, 0.0  ;;  %v684_v58 = vmul.f32 %v666_v53, %v652_v51 }
 0x224   : > { %v685_v57 = vmul.f32 %v671_v54, %v653_v2 }
 0x225   : > { %v686_v59 = vmul.f32 %v671_v54, %v654_v55  ;;  %v642_v60 = vpop.f32.mrb[4].mxu1 }
 0x226   : > { %v691_v61 = vadd.f32 %v685_v57, %v683_v56  ;;  %v643_v62 = vadd.f32 %v642_v60, %v574_v41  ;;  %v644_v63 = vpop.f32.mrb[5].mxu1 }
 0x227   : > { %v700_v0 = vadd.f32 %v686_v59, %v684_v58  ;;  %v645_v3 = vadd.f32 %v644_v63, %v574_v41  ;;  %v646_v4 = vpop.f32.mrb[6].mxu1 }
 0x228   : > { %v655_v5 = vmax.f32 %v643_v62, 0.0  ;;  %v647_v1 = vadd.f32 %v646_v4, %v579_v42  ;;  %v648_v6 = vpop.f32.mrb[7].mxu1 }
 0x229   : > { %v656_v8 = vmax.f32 %v645_v3, 0.0  ;;  %v649_v9 = vadd.f32 %v648_v6, %v579_v42 }
 0x22a   : > { %v687_v10 = vmul.f32 %v676_v7, %v655_v5  ;;  %v657_v11 = vmax.f32 %v647_v1, 0.0 }
 0x22b   : > { %v688_v13 = vmul.f32 %v676_v7, %v656_v8  ;;  %v658_v14 = vmax.f32 %v649_v9, 0.0 }
 0x22c   : > { %v692_v15 = vadd.f32 %v691_v61, %v687_v10  ;;  %v689_v16 = vmul.f32 %v681_v12, %v657_v11 }
 0x22d   : > { %v701_v17 = vadd.f32 %v700_v0, %v688_v13  ;;  %v690_v18 = vmul.f32 %v681_v12, %v658_v14 }
 0x22e   : > { %v693_v20 = vadd.f32 %v692_v15, %v689_v16 }
 0x22f   : > { %v702_v21 = vadd.f32 %v701_v17, %v690_v18 }
 0x230   : > { %v694_v22 = vrot.slane %v693_v20, 4 }
 0x231   : > { %v703_v23 = vrot.slane %v702_v21, 4 }
 0x232   : > { %v695_v25 = vadd.f32 %v694_v22, %v693_v20 }
 0x233   : > { %v704_v26 = vadd.f32 %v703_v23, %v702_v21 }
 0x234   : > { %v696_v27 = vrot.slane %v695_v25, 2 }
 0x235   : > { %v705_v28 = vrot.slane %v704_v26, 2 }
 0x236   : > { %v697_v30 = vadd.f32 %v696_v27, %v695_v25 }
 0x237   : > { %v706_v34 = vadd.f32 %v705_v28, %v704_v26 }
 0x238   : > { %v698_v35 = vrot.slane %v697_v30, 1 }
 0x239   : > { %v707_v36 = vrot.slane %v706_v34, 1 }
 0x23a   : > { %v699_v38 = vadd.f32 %v698_v35, %v697_v30 }
 0x23b   : > { %v708_v40 = vadd.f32 %v707_v36, %v706_v34 }
 0x23c   : > { %v719_v41 = vadd.f32 %v718_v37, %v699_v38 }
 0x23d   : > { %v720_v42 = vadd.f32 %v718_v37, %v708_v40 }
 0x23e   : > { %v721_v43 = vsub.f32 0.0, %v719_v41 }
 0x23f   : > { %v722_v45 = vsub.f32 0.0, %v720_v42 }
 0x241   : > { %v725_v46 = vcombine.low %v721_v43, %v722_v45 }
 0x243   : > { %v732_v47 = vrot.slane %v725_v46, %v731_v44 }
 0x245   : > { %v739_v48 = vrot.slane %v732_v47, %v731_v44 }
 0x247   : > { %745 = vst.msk [vmem:[%s274_s9] sm:$0x3] %vm743_vm3, %v739_v48 }
 0x248   : > { %1019 = shalt.err (!%p1016_p3)
}
 0x249   : > { %s1020_s14 = scalar_lea.hbm %s1315_s18, 32  ;;  %s1024_s25 = scalar_lea.hbm %s1364_s7, 64 }
 0x24a   : > { %p1021_p4 = scmp.ne.s32.totalorder %s1315_s18, %s1020_s14  ;;  %p1025_p9 = scmp.lt.u32.totalorder %s1315_s18, %s1364_s7 }
 0x24b   : > { %p1026_p10 = scmp.lt.u32.totalorder %s1024_s25, %s1020_s14  ;;  %p1028_p12 = scmp.lt.u32.totalorder %s1020_s14, %s1315_s18 }
 0x24c   : > { %p1022_p7 = pnand %p1021_p4, %p1151_p5 }
 0x24d   : > { %p1027_p11 = por %p1026_p10, %p1025_p9 }
 0x24e   : > { %p1023_p8 = pneg %p1022_p7 }
 0x24f   : > { %p1029_p13 = por %p1028_p12, %p1027_p11 }
 0x251   : > { %p1030_p0 = pnand %p1029_p13, %p1023_p8 }
 0x253   : > { %1033 = shalt.err (!%p1030_p0)
}
 0x254   : > { %961 = dma.vmem_to_hbm [thread:$0]  (%p1151_p5), %s1317_s10, 32, %s1315_s18, %s747_s19  }
 0x255 PF: > { %p967_p1 = scmp.ge.s32.totalorder %s1068_s29, 2  ;;  %s773_s9 = sand.u32 1, %s1056_s26  }
 0x256   : > { %s774_s15 = scalar_lea.sflag [#allocation4], %s773_s9 }
 0x257   : > { %p964_p2 = pnand %p967_p1, %p1155_p6 }
 0x259   : > { %1051 = dma.done.wait (!%p964_p2), %s774_s15, 32  }
 0x25a   : > { %1053 = vsyncadd (!%p964_p2), %s774_s15, 4294967264  ;;  %p19_p3 = scmp.ge.s32.totalorder %s1139_s8, 4   ;;  %s1369_s26 = smov %s1060_s27 }
 0x25b   : > { %s1370_s27 = smov %s1064_s28  ;;  %s1371_s28 = smov %s1149_s11 }
 0x25c   : > { %s1372_s29 = smov %s1139_s8  ;;  %21 = sbr.rel (!%p19_p3) target bundleno = 6 (0x6), region = 83 }
 0x263   :  { %779 = vsyncpa [#allocation4], 1 }
 0x264   :  { %781 = vsyncpa [#allocation4 + $0x1], 1 }

</bundles_post_ra>
